<compile_context>
chip_gen: v5e
topology: v5e:2x2
jax: 0.10.0
libtpu: 0.0.40
codegen_flags: <defaults>
</compile_context>

<pallas_src>
import math

import jax
import jax.numpy as jnp
import numpy as np
from jax.experimental import pallas as pl
from jax.experimental.pallas import tpu as pltpu

# ---- hyperparameters (FLD(input_dim=4, latent_dim=16, embed_dim_per_head=8,
#                           num_heads=2, function='L', depth=1, shared_out=True)) ----
INPUT_DIM = 4
LATENT_DIM = 16
EMBED_DIM_PER_HEAD = 8
NUM_HEADS = 2
P = 2                                            # function 'L' -> 2 basis coefficients
EMBED_DIM = EMBED_DIM_PER_HEAD * NUM_HEADS       # 16
EK = EMBED_DIM // NUM_HEADS                      # 8
DIM = 2 * INPUT_DIM                              # 8  (value dim after cat(X, M))
HIDDEN_DIM = LATENT_DIM                          # depth=1 decoder hidden
SEQ = 8
T_OUT = 8
BATCH = 2
LANES = 128
HP = NUM_HEADS * P

# this kernel relies on the (lucky but real) fact that these all pack to 128 lanes
assert SEQ * EMBED_DIM == LANES
assert HP * SEQ * INPUT_DIM == LANES
assert T_OUT * LATENT_DIM == LANES
assert T_OUT * HIDDEN_DIM == LANES


def _build_offsets():
    """Row offsets (8-aligned) of every piece inside the packed parameter slab."""
    order = [
        ("WTE", 1), ("BTE", 1), ("BK", 1), ("BO", 1), ("BD1", 1), ("BD2", 1),
        ("TEXP", SEQ), ("YEXP", T_OUT), ("TILE", SEQ * INPUT_DIM),
        ("WKB", LANES), ("WQE", LANES), ("SUMS", LANES),
        ("WOX", LANES), ("WOM", LANES), ("SEL0", LANES), ("SEL1", LANES),
        ("WD1", LANES), ("WD2", LANES),
    ]
    offs, cur = {}, 0
    for name, rows in order:
        offs[name] = cur
        cur += ((rows + 7) // 8) * 8
    return offs, cur


_OFF, SLAB_ROWS = _build_offsets()


def fld_kernel(t_ref, x_ref, m_ref, yt_ref, slab_ref, out_ref, coeffs_ref):
    def mat(name, rows=LANES):
        o = _OFF[name]
        return slab_ref[o:o + rows, :]

    def vec(name):
        o = _OFF[name]
        return slab_ref[o:o + 1, :]

    def dot(a, b):
        return jnp.dot(a, b, preferred_element_type=jnp.float32)

    t8 = t_ref[...]                      # (B, SEQ)      observation timesteps
    x2 = x_ref[...]                      # (B, SEQ*IN)   X flattened over (s, i)
    m2 = m_ref[...]                      # (B, SEQ*IN)   M flattened over (s, i)
    yt8 = yt_ref[...]                    # (B, T_OUT)    query timesteps

    # --- learn_time_embedding: Linear(1, E), sin() on channels e % num_heads == 0 ---
    # lanes are (s, e); TEXP broadcasts each timestep over the E embed channels.
    t128 = dot(t8, mat("TEXP", SEQ))                     # (B, SEQ*E)
    te = t128 * vec("WTE") + vec("BTE")
    e_idx = jax.lax.broadcasted_iota(jnp.int32, te.shape, 1) % EMBED_DIM
    te = jnp.where(e_idx % NUM_HEADS == 0, jnp.sin(te), te)

    # --- key_map (block-diagonal over s) and head-fused scores ---
    # WQE already folds query_map(query), the per-head channel masks, 1/sqrt(d_k) and the
    # broadcast over the INPUT_DIM value channels: output lanes are (h, p, s, i).
    km = dot(te, mat("WKB")) + vec("BK")                 # (B, SEQ*E)
    sc = dot(km, mat("WQE"))                             # (B, 128)

    # --- value / mask tiled over (h, p) lanes: cat(X,M)/cat(M,M) never materialized ---
    mask128 = dot(m2, mat("TILE", SEQ * INPUT_DIM))      # (B, 128) = M[b,s,i]
    x128 = dot(x2, mat("TILE", SEQ * INPUT_DIM))         # (B, 128) = X[b,s,i]

    # --- masked softmax over the sequence axis (seq folded into lanes) ---
    mb = jnp.max(sc, axis=-1, keepdims=True)             # per-row stabilizer (softmax-invariant)
    ew = jnp.exp(jnp.where(mask128 == 0.0, -1e9, sc) - mb)
    denom = dot(ew, mat("SUMS"))                         # segment-sum over s, broadcast back
    rec = pl.reciprocal(denom, approx=True)
    rec = rec * (2.0 - denom * rec)                      # one Newton step, keeps 5e-3 tol
    w = jnp.where(denom > 0.0, ew * rec, 1.0 / SEQ)      # all-masked -> uniform (torch parity)

    # --- attention readout folded straight into the shared output projection ---
    # X-half and M-half of the value share the same weights w (mask is cat(M, M)).
    coeffs = dot(w * x128, mat("WOX")) + dot(w * mask128, mat("WOM")) + vec("BO")
    coeffs_ref[...] = coeffs                             # lanes (p, latent); cols >= 32 are 0

    # --- function 'L': x(t) = c0 + t * c1, lanes become (t, latent) ---
    c0t = dot(coeffs, mat("SEL0"))
    c1t = dot(coeffs, mat("SEL1"))
    yt128 = dot(yt8, mat("YEXP", T_OUT))
    xlat = c0t + yt128 * c1t

    # --- decoder MLP: Linear -> ReLU -> Linear (block-diagonal over t) ---
    h1 = jnp.maximum(dot(xlat, mat("WD1")) + vec("BD1"), 0.0)
    out_ref[...] = dot(h1, mat("WD2")) + vec("BD2")      # lanes (t, out); cols >= 32 are 0


def init_params(key):
    """Deterministic synthetic parameters (Linear weights stored as (in, out))."""
    ks = jax.random.split(key, 13)

    def nrm(k, shape, scale=0.1):
        return scale * jax.random.normal(k, shape, jnp.float32)

    wte = nrm(ks[0], (1, EMBED_DIM))                  # time_embedding weight (1 -> E)
    bte = nrm(ks[1], (1, EMBED_DIM))                  # time_embedding bias
    q = nrm(ks[2], (P, EMBED_DIM), 1.0)               # self.query (torch.randn)
    wq = nrm(ks[3], (EMBED_DIM, EMBED_DIM))           # query_map
    bq = nrm(ks[4], (1, EMBED_DIM))
    wk = nrm(ks[5], (EMBED_DIM, EMBED_DIM))           # key_map
    bk = nrm(ks[6], (1, EMBED_DIM))
    wo = nrm(ks[7], (NUM_HEADS * DIM, LATENT_DIM))    # attn shared out Linear
    bo = nrm(ks[8], (1, LATENT_DIM))
    wd1 = nrm(ks[9], (LATENT_DIM, HIDDEN_DIM))        # decoder layer 1
    bd1 = nrm(ks[10], (1, HIDDEN_DIM))
    wd2 = nrm(ks[11], (HIDDEN_DIM, INPUT_DIM))        # decoder layer 2
    bd2 = nrm(ks[12], (1, INPUT_DIM))
    return (wte, bte, q, wq, bq, wk, bk, wo, bo, wd1, bd1, wd2, bd2)


def build_slab(params):
    """Pack all weights + batch-invariant derived matrices into one (SLAB_ROWS, 128) slab."""
    (wte, bte, q, wq, bq, wk, bk, wo, bo, wd1, bd1, wd2, bd2) = params
    f32 = jnp.float32
    inv = 1.0 / math.sqrt(EK)

    # hoisted batch-invariant compute: query_map(query) and the per-head channel masks
    qm = (q @ wq + bq).astype(f32)                                        # (P, E)
    head_sel = (jnp.arange(EMBED_DIM)[None, :] // EK
                == jnp.arange(NUM_HEADS)[:, None]).astype(f32)            # (H, E)
    qmh = (head_sel[:, None, :] * qm[None, :, :]).reshape(HP, EMBED_DIM)  # hp = h*P + p

    eyeS = jnp.eye(SEQ, dtype=f32)
    eyeP = jnp.eye(P, dtype=f32)
    eyeIN = jnp.eye(INPUT_DIM, dtype=f32)
    eyeT = jnp.eye(T_OUT, dtype=f32)
    eyeL = jnp.eye(LATENT_DIM, dtype=f32)

    # structural broadcast / tiling / segment-sum matrices (0/1)
    texp = jnp.kron(eyeS, jnp.ones((1, EMBED_DIM), f32))                  # (S, S*E)
    yexp = jnp.kron(eyeT, jnp.ones((1, LATENT_DIM), f32))                 # (T, T*L)
    tile = jnp.tile(jnp.eye(SEQ * INPUT_DIM, dtype=f32), (1, HP))         # (32, 128)
    sums = jnp.kron(jnp.eye(HP, dtype=f32),
                    jnp.kron(jnp.ones((SEQ, SEQ), f32), eyeIN))           # (128, 128)

    # key_map, block-diagonal over s
    wkb = jnp.kron(eyeS, wk)                                              # (S*E, S*E)

    # fused "scores" matrix: (s0==s) * qmh[hp,e] / sqrt(d_k), broadcast over value channel i
    wqe = (eyeS[:, None, None, :, None]
           * qmh.T[None, :, :, None, None]
           * jnp.ones((1, 1, 1, 1, INPUT_DIM), f32)) * inv
    wqe = wqe.reshape(SEQ * EMBED_DIM, HP * SEQ * INPUT_DIM)              # (128, 128)

    # shared output projection split into its X-half / M-half row blocks, folded with the
    # (hp,s,i) -> (p,latent) segment reduction
    wo_r = wo.reshape(NUM_HEADS, DIM, LATENT_DIM)

    def out_proj(w_half):  # (H, IN, L) -> (H*P*S*IN, P*L)
        m6 = (eyeP[None, :, None, None, :, None]
              * jnp.ones((1, 1, SEQ, 1, 1, 1), f32)
              * w_half[:, None, None, :, None, :])
        return m6.reshape(HP * SEQ * INPUT_DIM, P * LATENT_DIM)

    wox = out_proj(wo_r[:, :INPUT_DIM, :])                                # (128, 32)
    wom = out_proj(wo_r[:, INPUT_DIM:, :])                                # (128, 32)

    # coefficient selectors tiled over the T_OUT query timesteps
    sel0 = jnp.concatenate([jnp.tile(eyeL, (1, T_OUT)),
                            jnp.zeros((LATENT_DIM, T_OUT * LATENT_DIM), f32)], axis=0)
    sel1 = jnp.concatenate([jnp.zeros((LATENT_DIM, T_OUT * LATENT_DIM), f32),
                            jnp.tile(eyeL, (1, T_OUT))], axis=0)          # (32, 128)

    # decoder, block-diagonal over t
    wd1b = jnp.kron(eyeT, wd1)                                            # (128, 128)
    wd2b = jnp.kron(eyeT, wd2)                                            # (128, 32)

    pieces = {
        "WTE": jnp.tile(wte, (1, SEQ)),
        "BTE": jnp.tile(bte, (1, SEQ)),
        "BK": jnp.tile(bk, (1, SEQ)),
        "BO": jnp.tile(bo, (1, P)),
        "BD1": jnp.tile(bd1, (1, T_OUT)),
        "BD2": jnp.tile(bd2, (1, T_OUT)),
        "TEXP": texp, "YEXP": yexp, "TILE": tile,
        "WKB": wkb, "WQE": wqe, "SUMS": sums,
        "WOX": wox, "WOM": wom, "SEL0": sel0, "SEL1": sel1,
        "WD1": wd1b, "WD2": wd2b,
    }
    slab = jnp.zeros((SLAB_ROWS, LANES), f32)
    for name, piece in pieces.items():
        r, c = piece.shape
        slab = slab.at[_OFF[name]:_OFF[name] + r, :c].set(piece.astype(f32))
    return slab


def fld_forward(params, timesteps, X, M, y_time_steps, block_b=128):
    B, S = timesteps.shape
    T = y_time_steps.shape[1]
    assert S == SEQ and T == T_OUT and X.shape[-1] == INPUT_DIM

    bt = min(block_b, ((B + 7) // 8) * 8)        # batch tile (multiple of 8 sublanes)
    n_tiles = pl.cdiv(B, bt)
    Bp = n_tiles * bt
    pad = Bp - B

    f32 = jnp.float32
    t_p = jnp.pad(timesteps.astype(f32), ((0, pad), (0, 0)))
    x_p = jnp.pad(X.astype(f32), ((0, pad), (0, 0), (0, 0))).reshape(Bp, S * INPUT_DIM)
    m_p = jnp.pad(M.astype(f32), ((0, pad), (0, 0), (0, 0))).reshape(Bp, S * INPUT_DIM)
    y_p = jnp.pad(y_time_steps.astype(f32), ((0, pad), (0, 0)))
    slab = build_slab(params)

    def bspec(cols):
        return pl.BlockSpec((bt, cols), lambda i: (i, 0))

    out128, coeffs128 = pl.pallas_call(
        fld_kernel,
        out_shape=(jax.ShapeDtypeStruct((Bp, LANES), f32),
                   jax.ShapeDtypeStruct((Bp, LANES), f32)),
        grid_spec=pltpu.PrefetchScalarGridSpec(
            num_scalar_prefetch=0,
            grid=(n_tiles,),
            in_specs=[bspec(S), bspec(S * INPUT_DIM), bspec(S * INPUT_DIM), bspec(T),
                      pl.BlockSpec((SLAB_ROWS, LANES), lambda i: (0, 0))],
            out_specs=(bspec(LANES), bspec(LANES))),
        compiler_params=pltpu.CompilerParams(
            dimension_semantics=("parallel",),
            vmem_limit_bytes=32 * 1024 * 1024),
    )(t_p, x_p, m_p, y_p, slab)

    out = out128[:B, :T * INPUT_DIM].reshape(B, T, INPUT_DIM)
    coeffs = coeffs128[:B, :P * LATENT_DIM].reshape(B, P, LATENT_DIM)
    return out, coeffs


def fld_reference(params, timesteps, X, M, y_time_steps):
    """Pure-JAX reference reproducing the PyTorch forward semantics."""
    wte, bte, q, wq, bq, wk, bk, wo, bo, wd1, bd1, wd2, bd2 = params
    B, S = timesteps.shape
    te = timesteps[..., None] * wte[None] + bte[None]            # (B, S, E)
    ch = jnp.arange(EMBED_DIM)
    te = jnp.where((ch % NUM_HEADS == 0)[None, None, :], jnp.sin(te), te)
    value = jnp.concatenate([X, M], -1)                          # (B, S, DIM)
    mask = jnp.concatenate([M, M], -1)
    qm = q @ wq + bq                                             # (P, E)
    km = te @ wk + bk                                            # (B, S, E)
    qh = qm.reshape(P, NUM_HEADS, EK).transpose(1, 0, 2)         # (H, P, EK)
    kh = km.reshape(B, S, NUM_HEADS, EK).transpose(0, 2, 1, 3)   # (B, H, S, EK)
    scores = jnp.einsum('hpe,bhse->bhps', qh, kh) / math.sqrt(EK)
    s = jnp.broadcast_to(scores[..., None], (B, NUM_HEADS, P, S, DIM))
    s = jnp.where(mask[:, None, None, :, :] == 0, -1e9, s)
    p = jax.nn.softmax(s, axis=-2)
    x = jnp.sum(p * value[:, None, None, :, :], axis=-2)         # (B, H, P, DIM)
    x = x.transpose(0, 2, 1, 3).reshape(B, P, NUM_HEADS * DIM)
    coeffs = x @ wo + bo                                         # (B, P, LATENT)
    xlat = coeffs[:, 0:1, :] + y_time_steps[..., None] * coeffs[:, 1:2, :]
    h1 = jnp.maximum(xlat @ wd1 + bd1, 0.0)
    out = h1 @ wd2 + bd2
    return out, coeffs


if __name__ == "__main__":
    key = jax.random.PRNGKey(0)
    pkey, tkey, xkey, mkey, ykey = jax.random.split(key, 5)
    params = init_params(pkey)

    timesteps = jax.random.uniform(tkey, (BATCH, SEQ), jnp.float32)
    X = jax.random.normal(xkey, (BATCH, SEQ, INPUT_DIM), jnp.float32)
    M = jax.random.bernoulli(mkey, 0.7, (BATCH, SEQ, INPUT_DIM)).astype(jnp.float32)
    y_time_steps = jax.random.uniform(ykey, (BATCH, T_OUT), jnp.float32)

    out, coeffs = fld_forward(params, timesteps, X, M, y_time_steps)
    out, coeffs = jax.block_until_ready((out, coeffs))

    ref_out, ref_coeffs = fld_reference(params, timesteps, X, M, y_time_steps)
    np.testing.assert_allclose(np.asarray(coeffs), np.asarray(ref_coeffs),
                               rtol=5e-3, atol=5e-3)
    np.testing.assert_allclose(np.asarray(out), np.asarray(ref_out),
                               rtol=5e-3, atol=5e-3)

    print("KERNEL_OK")
</pallas_src>

<mosaic_0001>
module attributes {stable_mosaic.version = 11 : i64} {
  func.func @fld_kernel(%arg0: i32, %arg1: memref<8x8xf32, #tpu.memory_space<vmem>>, %arg2: memref<8x32xf32, #tpu.memory_space<vmem>>, %arg3: memref<8x32xf32, #tpu.memory_space<vmem>>, %arg4: memref<8x8xf32, #tpu.memory_space<vmem>>, %arg5: memref<1248x128xf32, #tpu.memory_space<vmem>>, %arg6: memref<8x128xf32, #tpu.memory_space<vmem>>, %arg7: memref<8x128xf32, #tpu.memory_space<vmem>>) attributes {dimension_semantics = [#tpu.dimension_semantics<parallel>], iteration_bounds = array<i64: 1>, scalar_prefetch = 0 : i64, scratch_operands = 0 : i64, tpu.core_type = #tpu.core_type<tc>, window_params = [{transform_indices = @transform_0, window_bounds = array<i64: 8, 8>}, {transform_indices = @transform_1, window_bounds = array<i64: 8, 32>}, {transform_indices = @transform_2, window_bounds = array<i64: 8, 32>}, {transform_indices = @transform_3, window_bounds = array<i64: 8, 8>}, {pipeline_mode = #tpu.pipeline_mode<synchronous>, transform_indices = @transform_4, window_bounds = array<i64: 1248, 128>}, {transform_indices = @transform_5, window_bounds = array<i64: 8, 128>}, {transform_indices = @transform_6, window_bounds = array<i64: 8, 128>}]} {
    %c0 = arith.constant 0 : index
    %c0_0 = arith.constant 0 : index
    %0 = vector.load %arg1[%c0, %c0_0] : memref<8x8xf32, #tpu.memory_space<vmem>>, vector<8x8xf32>
    %c0_1 = arith.constant 0 : index
    %c0_2 = arith.constant 0 : index
    %1 = vector.load %arg2[%c0_1, %c0_2] : memref<8x32xf32, #tpu.memory_space<vmem>>, vector<8x32xf32>
    %c0_3 = arith.constant 0 : index
    %c0_4 = arith.constant 0 : index
    %2 = vector.load %arg3[%c0_3, %c0_4] : memref<8x32xf32, #tpu.memory_space<vmem>>, vector<8x32xf32>
    %c0_5 = arith.constant 0 : index
    %c0_6 = arith.constant 0 : index
    %3 = vector.load %arg4[%c0_5, %c0_6] : memref<8x8xf32, #tpu.memory_space<vmem>>, vector<8x8xf32>
    %c48 = arith.constant 48 : index
    %c0_7 = arith.constant 0 : index
    %4 = vector.load %arg5[%c48, %c0_7] : memref<1248x128xf32, #tpu.memory_space<vmem>>, vector<8x128xf32>
    %cst = arith.constant dense<0.000000e+00> : vector<8x128xf32>
    %5 = tpu.matmul %0, %4, %cst {dimension_numbers = #tpu.dot_dimension_numbers<[1], [0], [0], [1], [0, 0, 1, 1], [], []>} : vector<8x8xf32>, vector<8x128xf32>, vector<8x128xf32> -> vector<8x128xf32>
    %c0_8 = arith.constant 0 : index
    %c0_9 = arith.constant 0 : index
    %6 = vector.load %arg5[%c0_8, %c0_9] : memref<1248x128xf32, #tpu.memory_space<vmem>>, vector<1x128xf32>
    %7 = vector.broadcast %6 : vector<1x128xf32> to vector<8x128xf32>
    %8 = arith.mulf %5, %7 : vector<8x128xf32>
    %c8 = arith.constant 8 : index
    %c0_10 = arith.constant 0 : index
    %9 = vector.load %arg5[%c8, %c0_10] : memref<1248x128xf32, #tpu.memory_space<vmem>>, vector<1x128xf32>
    %10 = vector.broadcast %9 : vector<1x128xf32> to vector<8x128xf32>
    %11 = arith.addf %8, %10 : vector<8x128xf32>
    %12 = tpu.iota {dimensions = array<i32: 1>} : vector<8x128xi32>
    %c16_i32 = arith.constant 16 : i32
    %c0_i32 = arith.constant 0 : i32
    %13 = arith.cmpi eq, %c16_i32, %c0_i32 : i32
    %c1_i32 = arith.constant 1 : i32
    %14 = arith.select %13, %c1_i32, %c16_i32 : i32
    %15 = vector.broadcast %14 : i32 to vector<8x128xi32>
    %16 = arith.remsi %12, %15 : vector<8x128xi32>
    %c0_i32_11 = arith.constant 0 : i32
    %17 = vector.broadcast %c0_i32_11 : i32 to vector<8x128xi32>
    %18 = arith.cmpi ne, %16, %17 : vector<8x128xi32>
    %c0_i32_12 = arith.constant 0 : i32
    %19 = vector.broadcast %c0_i32_12 : i32 to vector<8x128xi32>
    %20 = arith.cmpi slt, %16, %19 : vector<8x128xi32>
    %c0_i32_13 = arith.constant 0 : i32
    %21 = arith.cmpi slt, %14, %c0_i32_13 : i32
    %22 = vector.broadcast %21 : i1 to vector<8x128xi1>
    %23 = vector.broadcast %22 : vector<8x128xi1> to vector<8x128xi1>
    %24 = arith.xori %20, %23 : vector<8x128xi1>
    %25 = arith.andi %24, %18 : vector<8x128xi1>
    %26 = vector.broadcast %14 : i32 to vector<8x128xi32>
    %27 = arith.addi %16, %26 : vector<8x128xi32>
    %28 = arith.select %25, %27, %16 : vector<8x128xi1>, vector<8x128xi32>
    %c2_i32 = arith.constant 2 : i32
    %c0_i32_14 = arith.constant 0 : i32
    %29 = arith.cmpi eq, %c2_i32, %c0_i32_14 : i32
    %c1_i32_15 = arith.constant 1 : i32
    %30 = arith.select %29, %c1_i32_15, %c2_i32 : i32
    %31 = vector.broadcast %30 : i32 to vector<8x128xi32>
    %32 = arith.remsi %28, %31 : vector<8x128xi32>
    %c0_i32_16 = arith.constant 0 : i32
    %33 = vector.broadcast %c0_i32_16 : i32 to vector<8x128xi32>
    %34 = arith.cmpi ne, %32, %33 : vector<8x128xi32>
    %c0_i32_17 = arith.constant 0 : i32
    %35 = vector.broadcast %c0_i32_17 : i32 to vector<8x128xi32>
    %36 = arith.cmpi slt, %32, %35 : vector<8x128xi32>
    %c0_i32_18 = arith.constant 0 : i32
    %37 = arith.cmpi slt, %30, %c0_i32_18 : i32
    %38 = vector.broadcast %37 : i1 to vector<8x128xi1>
    %39 = vector.broadcast %38 : vector<8x128xi1> to vector<8x128xi1>
    %40 = arith.xori %36, %39 : vector<8x128xi1>
    %41 = arith.andi %40, %34 : vector<8x128xi1>
    %42 = vector.broadcast %30 : i32 to vector<8x128xi32>
    %43 = arith.addi %32, %42 : vector<8x128xi32>
    %44 = arith.select %41, %43, %32 : vector<8x128xi1>, vector<8x128xi32>
    %c0_i32_19 = arith.constant 0 : i32
    %45 = vector.broadcast %c0_i32_19 : i32 to vector<8x128xi32>
    %46 = arith.cmpi eq, %44, %45 : vector<8x128xi32>
    %47 = math.sin %11 : vector<8x128xf32>
    %48 = arith.select %46, %47, %11 : vector<8x128xi1>, vector<8x128xf32>
    %c96 = arith.constant 96 : index
    %c0_20 = arith.constant 0 : index
    %49 = vector.load %arg5[%c96, %c0_20] : memref<1248x128xf32, #tpu.memory_space<vmem>>, vector<128x128xf32>
    %cst_21 = arith.constant dense<0.000000e+00> : vector<8x128xf32>
    %50 = tpu.matmul %48, %49, %cst_21 {dimension_numbers = #tpu.dot_dimension_numbers<[1], [0], [0], [1], [0, 0, 1, 1], [], []>} : vector<8x128xf32>, vector<128x128xf32>, vector<8x128xf32> -> vector<8x128xf32>
    %c16 = arith.constant 16 : index
    %c0_22 = arith.constant 0 : index
    %51 = vector.load %arg5[%c16, %c0_22] : memref<1248x128xf32, #tpu.memory_space<vmem>>, vector<1x128xf32>
    %52 = vector.broadcast %51 : vector<1x128xf32> to vector<8x128xf32>
    %53 = arith.addf %50, %52 : vector<8x128xf32>
    %c224 = arith.constant 224 : index
    %c0_23 = arith.constant 0 : index
    %54 = vector.load %arg5[%c224, %c0_23] : memref<1248x128xf32, #tpu.memory_space<vmem>>, vector<128x128xf32>
    %cst_24 = arith.constant dense<0.000000e+00> : vector<8x128xf32>
    %55 = tpu.matmul %53, %54, %cst_24 {dimension_numbers = #tpu.dot_dimension_numbers<[1], [0], [0], [1], [0, 0, 1, 1], [], []>} : vector<8x128xf32>, vector<128x128xf32>, vector<8x128xf32> -> vector<8x128xf32>
    %c64 = arith.constant 64 : index
    %c0_25 = arith.constant 0 : index
    %56 = vector.load %arg5[%c64, %c0_25] : memref<1248x128xf32, #tpu.memory_space<vmem>>, vector<32x128xf32>
    %cst_26 = arith.constant dense<0.000000e+00> : vector<8x128xf32>
    %57 = tpu.matmul %2, %56, %cst_26 {dimension_numbers = #tpu.dot_dimension_numbers<[1], [0], [0], [1], [0, 0, 1, 1], [], []>} : vector<8x32xf32>, vector<32x128xf32>, vector<8x128xf32> -> vector<8x128xf32>
    %c64_27 = arith.constant 64 : index
    %c0_28 = arith.constant 0 : index
    %58 = vector.load %arg5[%c64_27, %c0_28] : memref<1248x128xf32, #tpu.memory_space<vmem>>, vector<32x128xf32>
    %cst_29 = arith.constant dense<0.000000e+00> : vector<8x128xf32>
    %59 = tpu.matmul %1, %58, %cst_29 {dimension_numbers = #tpu.dot_dimension_numbers<[1], [0], [0], [1], [0, 0, 1, 1], [], []>} : vector<8x32xf32>, vector<32x128xf32>, vector<8x128xf32> -> vector<8x128xf32>
    %cst_30 = arith.constant dense<0xFF800000> : vector<8xf32>
    %60 = vector.multi_reduction <maximumf>, %55, %cst_30 [1] : vector<8x128xf32> to vector<8xf32>
    %61 = vector.shape_cast %60 : vector<8xf32> to vector<8x1xf32>
    %cst_31 = arith.constant 0.000000e+00 : f32
    %62 = vector.broadcast %cst_31 : f32 to vector<8x128xf32>
    %63 = arith.cmpf oeq, %57, %62 : vector<8x128xf32>
    %cst_32 = arith.constant -1.000000e+09 : f32
    %64 = vector.broadcast %cst_32 : f32 to vector<8x128xf32>
    %65 = arith.select %63, %64, %55 : vector<8x128xi1>, vector<8x128xf32>
    %66 = vector.broadcast %61 : vector<8x1xf32> to vector<8x128xf32>
    %67 = arith.subf %65, %66 : vector<8x128xf32>
    %68 = math.exp %67 : vector<8x128xf32>
    %c352 = arith.constant 352 : index
    %c0_33 = arith.constant 0 : index
    %69 = vector.load %arg5[%c352, %c0_33] : memref<1248x128xf32, #tpu.memory_space<vmem>>, vector<128x128xf32>
    %cst_34 = arith.constant dense<0.000000e+00> : vector<8x128xf32>
    %70 = tpu.matmul %68, %69, %cst_34 {dimension_numbers = #tpu.dot_dimension_numbers<[1], [0], [0], [1], [0, 0, 1, 1], [], []>} : vector<8x128xf32>, vector<128x128xf32>, vector<8x128xf32> -> vector<8x128xf32>
    %71 = tpu.reciprocal %70 {approx = true} : vector<8x128xf32> -> vector<8x128xf32>
    %72 = arith.mulf %70, %71 : vector<8x128xf32>
    %cst_35 = arith.constant 2.000000e+00 : f32
    %73 = vector.broadcast %cst_35 : f32 to vector<8x128xf32>
    %74 = arith.subf %73, %72 : vector<8x128xf32>
    %75 = arith.mulf %71, %74 : vector<8x128xf32>
    %cst_36 = arith.constant 0.000000e+00 : f32
    %76 = vector.broadcast %cst_36 : f32 to vector<8x128xf32>
    %77 = arith.cmpf ogt, %70, %76 : vector<8x128xf32>
    %78 = arith.mulf %68, %75 : vector<8x128xf32>
    %cst_37 = arith.constant 1.250000e-01 : f32
    %79 = vector.broadcast %cst_37 : f32 to vector<8x128xf32>
    %80 = arith.select %77, %78, %79 : vector<8x128xi1>, vector<8x128xf32>
    %81 = arith.mulf %80, %59 : vector<8x128xf32>
    %c480 = arith.constant 480 : index
    %c0_38 = arith.constant 0 : index
    %82 = vector.load %arg5[%c480, %c0_38] : memref<1248x128xf32, #tpu.memory_space<vmem>>, vector<128x128xf32>
    %cst_39 = arith.constant dense<0.000000e+00> : vector<8x128xf32>
    %83 = tpu.matmul %81, %82, %cst_39 {dimension_numbers = #tpu.dot_dimension_numbers<[1], [0], [0], [1], [0, 0, 1, 1], [], []>} : vector<8x128xf32>, vector<128x128xf32>, vector<8x128xf32> -> vector<8x128xf32>
    %84 = arith.mulf %80, %57 : vector<8x128xf32>
    %c608 = arith.constant 608 : index
    %c0_40 = arith.constant 0 : index
    %85 = vector.load %arg5[%c608, %c0_40] : memref<1248x128xf32, #tpu.memory_space<vmem>>, vector<128x128xf32>
    %cst_41 = arith.constant dense<0.000000e+00> : vector<8x128xf32>
    %86 = tpu.matmul %84, %85, %cst_41 {dimension_numbers = #tpu.dot_dimension_numbers<[1], [0], [0], [1], [0, 0, 1, 1], [], []>} : vector<8x128xf32>, vector<128x128xf32>, vector<8x128xf32> -> vector<8x128xf32>
    %87 = arith.addf %83, %86 : vector<8x128xf32>
    %c24 = arith.constant 24 : index
    %c0_42 = arith.constant 0 : index
    %88 = vector.load %arg5[%c24, %c0_42] : memref<1248x128xf32, #tpu.memory_space<vmem>>, vector<1x128xf32>
    %89 = vector.broadcast %88 : vector<1x128xf32> to vector<8x128xf32>
    %90 = arith.addf %87, %89 : vector<8x128xf32>
    %c0_43 = arith.constant 0 : index
    %c0_44 = arith.constant 0 : index
    %91 = vector.load %arg7[%c0_43, %c0_44] : memref<8x128xf32, #tpu.memory_space<vmem>>, vector<8x128xf32>
    tpu.vector_store %arg7[%c0_43, %c0_44], %90 {strides = array<i32>} : memref<8x128xf32, #tpu.memory_space<vmem>>, vector<8x128xf32>,
    %c736 = arith.constant 736 : index
    %c0_45 = arith.constant 0 : index
    %92 = vector.load %arg5[%c736, %c0_45] : memref<1248x128xf32, #tpu.memory_space<vmem>>, vector<128x128xf32>
    %cst_46 = arith.constant dense<0.000000e+00> : vector<8x128xf32>
    %93 = tpu.matmul %90, %92, %cst_46 {dimension_numbers = #tpu.dot_dimension_numbers<[1], [0], [0], [1], [0, 0, 1, 1], [], []>} : vector<8x128xf32>, vector<128x128xf32>, vector<8x128xf32> -> vector<8x128xf32>
    %c864 = arith.constant 864 : index
    %c0_47 = arith.constant 0 : index
    %94 = vector.load %arg5[%c864, %c0_47] : memref<1248x128xf32, #tpu.memory_space<vmem>>, vector<128x128xf32>
    %cst_48 = arith.constant dense<0.000000e+00> : vector<8x128xf32>
    %95 = tpu.matmul %90, %94, %cst_48 {dimension_numbers = #tpu.dot_dimension_numbers<[1], [0], [0], [1], [0, 0, 1, 1], [], []>} : vector<8x128xf32>, vector<128x128xf32>, vector<8x128xf32> -> vector<8x128xf32>
    %c56 = arith.constant 56 : index
    %c0_49 = arith.constant 0 : index
    %96 = vector.load %arg5[%c56, %c0_49] : memref<1248x128xf32, #tpu.memory_space<vmem>>, vector<8x128xf32>
    %cst_50 = arith.constant dense<0.000000e+00> : vector<8x128xf32>
    %97 = tpu.matmul %3, %96, %cst_50 {dimension_numbers = #tpu.dot_dimension_numbers<[1], [0], [0], [1], [0, 0, 1, 1], [], []>} : vector<8x8xf32>, vector<8x128xf32>, vector<8x128xf32> -> vector<8x128xf32>
    %98 = arith.mulf %97, %95 : vector<8x128xf32>
    %99 = arith.addf %93, %98 : vector<8x128xf32>
    %c992 = arith.constant 992 : index
    %c0_51 = arith.constant 0 : index
    %100 = vector.load %arg5[%c992, %c0_51] : memref<1248x128xf32, #tpu.memory_space<vmem>>, vector<128x128xf32>
    %cst_52 = arith.constant dense<0.000000e+00> : vector<8x128xf32>
    %101 = tpu.matmul %99, %100, %cst_52 {dimension_numbers = #tpu.dot_dimension_numbers<[1], [0], [0], [1], [0, 0, 1, 1], [], []>} : vector<8x128xf32>, vector<128x128xf32>, vector<8x128xf32> -> vector<8x128xf32>
    %c32 = arith.constant 32 : index
    %c0_53 = arith.constant 0 : index
    %102 = vector.load %arg5[%c32, %c0_53] : memref<1248x128xf32, #tpu.memory_space<vmem>>, vector<1x128xf32>
    %103 = vector.broadcast %102 : vector<1x128xf32> to vector<8x128xf32>
    %104 = arith.addf %101, %103 : vector<8x128xf32>
    %cst_54 = arith.constant 0.000000e+00 : f32
    %105 = vector.broadcast %cst_54 : f32 to vector<8x128xf32>
    %106 = arith.maximumf %104, %105 : vector<8x128xf32>
    %c1120 = arith.constant 1120 : index
    %c0_55 = arith.constant 0 : index
    %107 = vector.load %arg5[%c1120, %c0_55] : memref<1248x128xf32, #tpu.memory_space<vmem>>, vector<128x128xf32>
    %cst_56 = arith.constant dense<0.000000e+00> : vector<8x128xf32>
    %108 = tpu.matmul %106, %107, %cst_56 {dimension_numbers = #tpu.dot_dimension_numbers<[1], [0], [0], [1], [0, 0, 1, 1], [], []>} : vector<8x128xf32>, vector<128x128xf32>, vector<8x128xf32> -> vector<8x128xf32>
    %c40 = arith.constant 40 : index
    %c0_57 = arith.constant 0 : index
    %109 = vector.load %arg5[%c40, %c0_57] : memref<1248x128xf32, #tpu.memory_space<vmem>>, vector<1x128xf32>
    %110 = vector.broadcast %109 : vector<1x128xf32> to vector<8x128xf32>
    %111 = arith.addf %108, %110 : vector<8x128xf32>
    %c0_58 = arith.constant 0 : index
    %c0_59 = arith.constant 0 : index
    %112 = vector.load %arg6[%c0_58, %c0_59] : memref<8x128xf32, #tpu.memory_space<vmem>>, vector<8x128xf32>
    tpu.vector_store %arg6[%c0_58, %c0_59], %111 {strides = array<i32>} : memref<8x128xf32, #tpu.memory_space<vmem>>, vector<8x128xf32>,
    return
  }
  func.func @transform_0(%arg0: i32) -> (i32, i32) {
    %c0_i32 = arith.constant 0 : i32
    %c0_i32_0 = arith.constant 0 : i32
    return %arg0, %c0_i32 : i32, i32
  }
  func.func @transform_1(%arg0: i32) -> (i32, i32) {
    %c0_i32 = arith.constant 0 : i32
    %c0_i32_0 = arith.constant 0 : i32
    return %arg0, %c0_i32 : i32, i32
  }
  func.func @transform_2(%arg0: i32) -> (i32, i32) {
    %c0_i32 = arith.constant 0 : i32
    %c0_i32_0 = arith.constant 0 : i32
    return %arg0, %c0_i32 : i32, i32
  }
  func.func @transform_3(%arg0: i32) -> (i32, i32) {
    %c0_i32 = arith.constant 0 : i32
    %c0_i32_0 = arith.constant 0 : i32
    return %arg0, %c0_i32 : i32, i32
  }
  func.func @transform_4(%arg0: i32) -> (i32, i32) {
    %c0_i32 = arith.constant 0 : i32
    %c0_i32_0 = arith.constant 0 : i32
    %c0_i32_1 = arith.constant 0 : i32
    return %c0_i32, %c0_i32_0 : i32, i32
  }
  func.func @transform_5(%arg0: i32) -> (i32, i32) {
    %c0_i32 = arith.constant 0 : i32
    %c0_i32_0 = arith.constant 0 : i32
    return %arg0, %c0_i32 : i32, i32
  }
  func.func @transform_6(%arg0: i32) -> (i32, i32) {
    %c0_i32 = arith.constant 0 : i32
    %c0_i32_0 = arith.constant 0 : i32
    return %arg0, %c0_i32 : i32, i32
  }
}

</mosaic_0001>

<bundles_post_ra>
// kernel: tpu_custom_call.1
= control target key start
LH: loop header
LB: loop body
LE: loop exit
PB: predicated region body
PF: predicated region fallthrough
CT: control target
= control target key end

     0   :  { %12 = vsyncpa [#allocation3], 0  ;;  %s1139_s0 = inlined_call_operand.hbm [shape: f32[8,8], index: 0, kind: input, shape index: {}]   ;;  %s1140_s1 = inlined_call_operand.hbm [shape: f32[8,32], index: 1, kind: input, shape index: {}]   ;;  %s1141_s2 = inlined_call_operand.hbm [shape: f32[8,32], index: 2, kind: input, shape index: {}]   ;;  %s1142_s3 = inlined_call_operand.hbm [shape: f32[8,8], index: 3, kind: input, shape index: {}]   ;;  %s1143_s4 = inlined_call_operand.hbm [shape: f32[1248,128], index: 4, kind: input, shape index: {}]   ;;  %s1144_s5 = inlined_call_operand.hbm [shape: f32[8,128], index: 5, kind: output, shape index: {0}]   ;;  %s1145_s6 = inlined_call_operand.hbm [shape: f32[8,128], index: 6, kind: output, shape index: {1}]  }
   0x1   :  { %13 = vsyncpa [#allocation6], 0 }
   0x2   :  { %14 = vsyncpa [#allocation9], 0 }
   0x3   :  { %15 = vsyncpa [#allocation4], 0  ;;  %s33_s23 = sshll.u32 %s1140_s1, 4  ;;  %s34_s23 = int_to_ptr.hbm [resolvable:$true] %s33_s23 }
   0x4   :  { %16 = vsyncpa [#allocation13], 0  ;;  %s986_s24 = smov [#allocation5]   ;;  %s55_s28 = sshll.u32 %s1142_s3, 4  ;;  %s56_s28 = int_to_ptr.hbm [resolvable:$true] %s55_s28 }
   0x5   :  { %s35_s25 = sshll.u32 %s986_s24, 4  ;;  %s987_s29 = smov [#allocation8]   ;;  %s36_s25 = int_to_ptr.vmem [resolvable:$true] %s35_s25 }
   0x6   :  { %38 = dma.hbm_to_vmem [thread:$0]  %s34_s23, 128, %s36_s25, [#allocation6]  }
   0x7   :  { %s57_s30 = sshll.u32 %s987_s29, 4  ;;  %s22_s9 = sshll.u32 %s1139_s0, 4  ;;  %s58_s30 = int_to_ptr.vmem [resolvable:$true] %s57_s30  ;;  %s23_s9 = int_to_ptr.hbm [resolvable:$true] %s22_s9 }
   0x8   :  { %60 = dma.hbm_to_vmem [thread:$0]  %s56_s28, 128, %s58_s30, [#allocation9]  }
   0x9   :  { %s44_s11 = sshll.u32 %s1141_s2, 4  ;;  %s988_s12 = smov [#allocation2]   ;;  %s45_s11 = int_to_ptr.hbm [resolvable:$true] %s44_s11 }
   0xa   :  { %s24_s13 = sshll.u32 %s988_s12, 4  ;;  %s989_s3 = smov [#allocation7]   ;;  %s25_s13 = int_to_ptr.vmem [resolvable:$true] %s24_s13 }
   0xb   :  { %27 = dma.hbm_to_vmem [thread:$0]  %s23_s9, 128, %s25_s13, [#allocation3]  }
   0xc   :  { %s46_s14 = sshll.u32 %s989_s3, 4  ;;  %s65_s17 = sshll.u32 %s1143_s4, 4  ;;  %s47_s14 = int_to_ptr.vmem [resolvable:$true] %s46_s14  ;;  %s66_s17 = int_to_ptr.hbm [resolvable:$true] %s65_s17 }
   0xd   :  { %49 = dma.hbm_to_vmem [thread:$0]  %s45_s11, 128, %s47_s14, [#allocation6]  }
   0xe   :  { %s990_s0 = smov [#allocation10]   ;;  %s991_s19 = smov 128  }
   0xf   :  { %s67_s18 = sshll.u32 %s990_s0, 4  ;;  %s992_s20 = smov 8   ;;  %s68_s18 = int_to_ptr.vmem [resolvable:$true] %s67_s18 }
  0x10   :  { %73 = dma.hbm_to_vmem [thread:$0]  %s66_s17, 19968, %s68_s18, [#allocation9], %s991_s19, %s991_s19, %s992_s20  }
  0x11   :  { %976 = dma.done.wait [#allocation3], 128  }
  0x12   :  { %977 = vsyncadd [#allocation3], 4294967168 }
  0x13   :  { %978 = dma.done.wait [#allocation6], 256  }
  0x14   :  { %979 = vsyncadd [#allocation6], 4294967040 }
  0x15   :  { %980 = dma.done.wait [#allocation9], 20096  }
  0x16   :  { %981 = vsyncadd [#allocation9], 4294947200  ;;  %vm99_vm0 = vcmask 64512   ;;  %v98_v0 = vld [vmem:[#allocation10 + $0x30] sm:$0xff]  ;;  %v94_v1 = vld [vmem:[#allocation2] sm:$0xff]  ;;  %s1000_s2 = smov [#allocation12]  }
  0x17   :  { %118 = vmatpush.msra.mxu0 %v98_v0  ;;  %v327_v2 = vld [vmem:[#allocation10 + $0xd8] sm:$0xff]  ;;  %v326_v3 = vld [vmem:[#allocation10 + $0xd0] sm:$0xff]  ;;  %v325_v4 = vld [vmem:[#allocation10 + $0xc8] sm:$0xff]  ;;  %v993_v34 = vmov 683565275   ;;  %s756_s4 = sshll.u32 %s1000_s2, 4  ;;  %s757_s4 = int_to_ptr.vmem [resolvable:$true] %s756_s4 }
  0x18   :  { %775 = vmatmul.msk.f32.vlgmr.msra.gmra.mxu0 %vm99_vm0, %v94_v1  ;;  %330 = vmatpush.msra.mxu1 %v327_v2  ;;  %v324_v5 = vld [vmem:[#allocation10 + $0xc0] sm:$0xff]  ;;  %v323_v6 = vld [vmem:[#allocation10 + $0xb8] sm:$0xff]  ;;  %v322_v7 = vld [vmem:[#allocation10 + $0xb0] sm:$0xff]  ;;  %v994_v36 = vmov 2475754826   ;;  %s758_s23 = sshll.u32 %s1145_s6, 4  ;;  %s759_s23 = int_to_ptr.hbm [resolvable:$true] %s758_s23 }
  0x19   :  { %v321_v8 = vld [vmem:[#allocation10 + $0xa8] sm:$0xff]  ;;  %v798_v9 = vld [vmem:[#allocation10] ss:$0 sm:$0xff]  ;;  %v319_v12 = vld [vmem:[#allocation10 + $0x98] sm:$0xff]  ;;  %v995_v39 = vmov 2131351028  }
  0x1a   :  { %331 = vmatpush.msra.mxu1 %v326_v3  ;;  %v320_v10 = vld [vmem:[#allocation10 + $0xa0] sm:$0xff]  ;;  %v799_v11 = vld [vmem:[#allocation10 + $0x8] ss:$0 sm:$0xff]  ;;  %v318_v15 = vld [vmem:[#allocation10 + $0x90] sm:$0xff]  ;;  %v996_v42 = vmov 2102212464  }
  0x1b   :  { %v317_v17 = vld [vmem:[#allocation10 + $0x88] sm:$0xff]  ;;  %v316_v19 = vld [vmem:[#allocation10 + $0x80] sm:$0xff]  ;;  %v315_v21 = vld [vmem:[#allocation10 + $0x78] sm:$0xff]  ;;  %v997_v45 = vmov 920167782   ;;  %s1001_s24 = smov [#allocation11]  }
  0x1c   :  { %332 = vmatpush.msra.mxu1 %v325_v4  ;;  %v314_v23 = vld [vmem:[#allocation10 + $0x70] sm:$0xff]  ;;  %v313_v26 = vld [vmem:[#allocation10 + $0x68] sm:$0xff]  ;;  %v312_v27 = vld [vmem:[#allocation10 + $0x60] sm:$0xff]  ;;  %v998_v48 = vmov 1326507024   ;;  %s745_s25 = sshll.u32 %s1001_s24, 4  ;;  %s746_s25 = int_to_ptr.vmem [resolvable:$true] %s745_s25 }
  0x1d   :  { %s747_s28 = sshll.u32 %s1144_s5, 4  ;;  %s748_s28 = int_to_ptr.hbm [resolvable:$true] %s747_s28 }
  0x1e   :  { %333 = vmatpush.msra.mxu1 %v324_v5 }
  0x20   :  { %334 = vmatpush.msra.mxu1 %v323_v6 }
  0x22   :  { %335 = vmatpush.msra.mxu1 %v322_v7 }
  0x24   :  { %336 = vmatpush.msra.mxu1 %v321_v8 }
  0x26   :  { %337 = vmatpush.msra.mxu1 %v320_v10 }
  0x28   :  { %338 = vmatpush.msra.mxu1 %v319_v12 }
  0x2a   :  { %339 = vmatpush.msra.mxu1 %v318_v15 }
  0x2c   :  { %340 = vmatpush.msra.mxu1 %v317_v17 }
  0x2e   :  { %341 = vmatpush.msra.mxu1 %v316_v19  ;;  %v999_v19 = vmov 0  }
  0x30   :  { %342 = vmatpush.msra.mxu1 %v315_v21 }
  0x32   :  { %343 = vmatpush.msra.mxu1 %v314_v23 }
  0x34   :  { %344 = vmatpush.msra.mxu1 %v313_v26 }
  0x36   :  { %345 = vmatpush.msra.mxu1 %v312_v27 }
  0x95   :  { %v120_v13 = vpop.f32.mrf.mxu0 }
  0x96   :  { %v125_v14 = vmul.f32 %v798_v9, %v120_v13 }
  0x98   :  { %v1053_v16 = vadd.f32 %v799_v11, %v125_v14 }
  0x9a   :  { %v159_v18 = vand.u32 2139095040, %v1053_v16  ;;  %v156_v24 = vand.u32 2147483647, %v1053_v16  ;;  %vm158_vm13 = vcmp.lt.s32.totalorder %v1053_v16, 0 }
  0x9c   :  { %v160_v20 = vshrl.u32 %v159_v18, 23  ;;  %v163_v29 = vand.u32 8388607, %v156_v24  ;;  %vm1107_vm14 = vcmp.le.f32.partialorder %v156_v24, 0.7853982  ;;  %v129_v24 = vlaneseq }
  0x9e   :  { %v776_v22 = vadd.s32 4294967169, %v160_v20  ;;  %v164_v33 = vor.u32 8388608, %v163_v29 }
  0xa0   :  { %v166_v25 = vadd.s32 1, %v776_v22  ;;  %v1070_v55 = vshll.u32 %v164_v33, 8 }
  0xa2   :  { %vm167_vm1 = vcmp.gt.s32.totalorder %v166_v25, 0  ;;  %v205_v0 = vand.u32 65535, %v1070_v55  ;;  %v206_v1 = vshrl.u32 %v1070_v55, 16 }
  0xa3   :  { %v168_v28 = vsel %vm167_vm1, %v166_v25, 0 }
  0xa4   :  { %v170_v30 = vand.u32 31, %v168_v28  ;;  %v1061_v32 = vshrl.u32 %v168_v28, 5 }
  0xa6   :  { %v1059_v31 = vsub.s32 32, %v170_v30  ;;  %v173_v35 = vshll.u32 %v993_v34, %v170_v30  ;;  %v176_v37 = vshll.u32 %v994_v36, %v170_v30  ;;  %v179_v41 = vshll.u32 %v995_v39, %v170_v30 }
  0xa7   :  { %v182_v44 = vshll.u32 %v996_v42, %v170_v30  ;;  %v185_v47 = vshll.u32 %v997_v45, %v170_v30  ;;  %vm188_vm2 = vcmp.lt.s32.totalorder %v1061_v32, 1  ;;  %vm191_vm3 = vcmp.lt.s32.totalorder %v1061_v32, 4 }
  0xa8   :  { %v174_v38 = vshrl.u32 %v994_v36, %v1059_v31  ;;  %v177_v40 = vshrl.u32 %v995_v39, %v1059_v31  ;;  %v180_v43 = vshrl.u32 %v996_v42, %v1059_v31  ;;  %v183_v46 = vshrl.u32 %v997_v45, %v1059_v31 }
  0xa9   :  { %v186_v49 = vshrl.u32 %v998_v48, %v1059_v31  ;;  %vm190_vm4 = vcmp.lt.s32.totalorder %v1061_v32, 3  ;;  %vm189_vm5 = vcmp.lt.s32.totalorder %v1061_v32, 2  ;;  %v172_v29 = vshrl.u32 %v993_v34, %v1059_v31 }
  0xaa   :  { %v175_v50 = vor.u32 %v174_v38, %v173_v35  ;;  %v178_v51 = vor.u32 %v177_v40, %v176_v37  ;;  %v181_v52 = vor.u32 %v180_v43, %v179_v41  ;;  %v184_v53 = vor.u32 %v183_v46, %v182_v44 }
  0xab   :  { %v187_v54 = vor.u32 %v186_v49, %v185_v47 }
  0xac   :  { %v196_v56 = vsel %vm188_vm2, %v175_v50, %v178_v51  ;;  %v200_v57 = vsel %vm188_vm2, %v178_v51, %v181_v52  ;;  %v197_v58 = vsel %vm191_vm3, %v184_v53, 920167782  ;;  %v193_v26 = vsel %vm191_vm3, %v181_v52, 2102212464 }
  0xad   :  { %v201_v59 = vsel %vm191_vm3, %v187_v54, 1326507024  ;;  %v198_v60 = vsel %vm190_vm4, %v181_v52, %v197_v58  ;;  %v192_v38 = vsel %vm188_vm2, %v172_v29, %v175_v50  ;;  %v194_v39 = vsel %vm190_vm4, %v178_v51, %v193_v26  ;;  %v358_v26 = vld [vmem:[#allocation10 + $0x120] sm:$0xff] }
  0xae   :  { %v202_v61 = vsel %vm190_vm4, %v184_v53, %v201_v59  ;;  %v199_v62 = vsel %vm189_vm5, %v196_v56, %v198_v60  ;;  %v195_v31 = vsel %vm189_vm5, %v192_v38, %v194_v39  ;;  %v356_v38 = vld [vmem:[#allocation10 + $0x110] sm:$0xff]  ;;  %vm299_vm4 = vweird.f32 %v1053_v16 }
  0xaf   :  { %v203_v63 = vsel %vm189_vm5, %v200_v57, %v202_v61  ;;  %v229_v4 = vand.u32 65535, %v199_v62  ;;  %v230_v5 = vshrl.u32 %v199_v62, 16  ;;  %v249_v47 = vmul.u32 %v1070_v55, %v195_v31  ;;  %v354_v31 = vld [vmem:[#allocation10 + $0x100] sm:$0xff] }
  0xb0   :  { %v207_v2 = vand.u32 65535, %v203_v63  ;;  %v208_v3 = vshrl.u32 %v203_v63, 16  ;;  %vm390_vm5 = vcmask 261120  }
  0xb1   :  { %v232_v8 = vmul.u32 %v230_v5, %v205_v0  ;;  %v233_v9 = vmul.u32 %v229_v4, %v206_v1  ;;  %v231_v13 = vmul.u32 %v229_v4, %v205_v0  ;;  %v234_v18 = vmul.u32 %v230_v5, %v206_v1  ;;  %v364_v4 = vld [vmem:[#allocation10 + $0x150] sm:$0xff] }
  0xb2   :  { %v210_v6 = vmul.u32 %v208_v3, %v205_v0  ;;  %v211_v7 = vmul.u32 %v207_v2, %v206_v1  ;;  %v209_v10 = vmul.u32 %v207_v2, %v205_v0  ;;  %v212_v12 = vmul.u32 %v208_v3, %v206_v1  ;;  %v365_v3 = vld [vmem:[#allocation10 + $0x158] sm:$0xff] }
  0xb3   :  { %v235_v14 = vshll.u32 %v232_v8, 16  ;;  %v237_v21 = vshll.u32 %v233_v9, 16  ;;  %v236_v36 = vshrl.u32 %v232_v8, 16  ;;  %v238_v42 = vshrl.u32 %v233_v9, 16  ;;  %366 = vmatpush.msra.mxu2 %v365_v3  ;;  %v362_v9 = vld [vmem:[#allocation10 + $0x140] sm:$0xff] }
  0xb4   :  { %v213_v11 = vshll.u32 %v210_v6, 16  ;;  %v215_v15 = vshll.u32 %v211_v7, 16  ;;  %v214_v30 = vshrl.u32 %v210_v6, 16  ;;  %v216_v40 = vshrl.u32 %v211_v7, 16  ;;  %v363_v7 = vld [vmem:[#allocation10 + $0x148] sm:$0xff]  ;;  %v456_v3 = vld [vmem:[#allocation10 + $0x1c0] sm:$0xff] }
  0xb5   :  { %vm239_vm7 = vc.u32 %v231_v13, %v235_v14  ;;  %v241_v22 = vadd.s32 %v235_v14, %v231_v13  ;;  %367 = vmatpush.msra.mxu2 %v364_v4  ;;  %v361_v13 = vld [vmem:[#allocation10 + $0x138] sm:$0xff]  ;;  %v387_v14 = vld [vmem:[#allocation10 + $0x48] sm:$0xff] }
  0xb6   :  { %vm217_vm6 = vc.u32 %v209_v10, %v213_v11  ;;  %v219_v17 = vadd.s32 %v213_v11, %v209_v10  ;;  %v240_v25 = vsel %vm239_vm7, 1, %v999_v19  ;;  %v389_v10 = vld [vmem:[#allocation10 + $0x58] sm:$0xff]  ;;  %v388_v11 = vld [vmem:[#allocation10 + $0x50] sm:$0xff] }
  0xb7   :  { %v218_v20 = vsel %vm217_vm6, 1, %v999_v19  ;;  %v242_v28 = vadd.s32 %v240_v25, %v234_v18  ;;  %vm243_vm9 = vc.u32 %v241_v22, %v237_v21  ;;  %v245_v45 = vadd.s32 %v241_v22, %v237_v21  ;;  %368 = vmatpush.msra.mxu2 %v363_v7  ;;  %406 = vmatpush.msra.mxu3 %v389_v10  ;;  %v360_v18 = vld [vmem:[#allocation10 + $0x130] sm:$0xff]  ;;  %v359_v22 = vld [vmem:[#allocation10 + $0x128] sm:$0xff]  ;;  %v455_v4 = vld [vmem:[#allocation10 + $0x1b8] sm:$0xff] }
  0xb8   :  { %v220_v23 = vadd.s32 %v218_v20, %v212_v12  ;;  %vm221_vm8 = vc.u32 %v219_v17, %v215_v15  ;;  %v244_v35 = vsel %vm243_vm9, 1, %v999_v19  ;;  %429 = vmatpush.msrb.mxu0 %v389_v10  ;;  %v452_v7 = vld [vmem:[#allocation10 + $0x1a0] sm:$0xff]  ;;  %v445_v15 = vld [vmem:[#allocation10 + $0x168] sm:$0xff] }
  0xb9   :  { %v222_v27 = vsel %vm221_vm8, 1, %v999_v19  ;;  %v246_v37 = vadd.s32 %v244_v35, %v242_v28  ;;  %369 = vmatpush.msra.mxu2 %v362_v9  ;;  %407 = vmatpush.msra.mxu3 %v388_v11  ;;  %v450_v9 = vld [vmem:[#allocation10 + $0x190] sm:$0xff] }
  0xba   :  { %v224_v33 = vadd.s32 %v222_v27, %v220_v23  ;;  %430 = vmatpush.msrb.mxu0 %v388_v11  ;;  %v449_v11 = vld [vmem:[#allocation10 + $0x188] sm:$0xff] }
  0xbb   :  { %v247_v43 = vadd.s32 %v246_v37, %v236_v36  ;;  %370 = vmatpush.msra.mxu2 %v361_v13  ;;  %408 = vmatpush.msra.mxu3 %v387_v14  ;;  %v447_v13 = vld [vmem:[#allocation10 + $0x178] sm:$0xff] }
  0xbc   :  { %v225_v41 = vadd.s32 %v224_v33, %v214_v30  ;;  %431 = vmatpush.msrb.mxu0 %v387_v14  ;;  %v357_v30 = vld [vmem:[#allocation10 + $0x118] sm:$0xff]  ;;  %v130_v33 = vand.u32 127, %v129_v24  ;;  %v446_v14 = vld [vmem:[#allocation10 + $0x170] sm:$0xff]  ;;  %v501_v24 = vld [vmem:[#allocation10 + $0x248] sm:$0xff] }
  0xbd   :  { %v248_v34 = vadd.s32 %v247_v43, %v238_v42  ;;  %371 = vmatpush.msra.mxu2 %v360_v18  ;;  %v95_v18 = vld [vmem:[#allocation5] sm:$0xff] }
  0xbe   :  { %v226_v44 = vadd.s32 %v225_v41, %v216_v40  ;;  %v355_v41 = vld [vmem:[#allocation10 + $0x108] sm:$0xff]  ;;  %v135_v43 = vand.u32 15, %v130_v33 }
  0xbf   :  { %v252_v46 = vadd.s32 1, %v248_v34  ;;  %372 = vmatpush.msra.mxu2 %v359_v22  ;;  %v502_v22 = vld [vmem:[#allocation10 + $0x250] sm:$0xff] }
  0xc0   :  { %vm251_vm10 = vc.u32 %v226_v44, %v245_v45  ;;  %v250_v32 = vadd.s32 %v245_v45, %v226_v44 }
  0xc1   :  { %v253_v48 = vsel %vm251_vm10, %v252_v46, %v248_v34  ;;  %373 = vmatpush.msra.mxu2 %v358_v26  ;;  %v517_v26 = vld [vmem:[#allocation10 + $0x2c0] sm:$0xff] }
  0xc2   :  { %v254_v49 = vadd.s32 %v253_v48, %v249_v47  ;;  %v353_v47 = vld [vmem:[#allocation10 + $0xf8] sm:$0xff] }
  0xc3   :  { %374 = vmatpush.msra.mxu2 %v357_v30  ;;  %v515_v30 = vld [vmem:[#allocation10 + $0x2b0] sm:$0xff] }
  0xc4   :  { %v255_v50 = vadd.s32 536870912, %v254_v49 }
  0xc5   :  { %375 = vmatpush.msra.mxu2 %v356_v38 }
  0xc6   :  { %v256_v52 = vshrl.u32 %v255_v50, 30 }
  0xc7   :  { %376 = vmatpush.msra.mxu2 %v355_v41  ;;  %v497_v41 = vld [vmem:[#allocation10 + $0x228] sm:$0xff] }
  0xc8   :  { %v257_v53 = vshll.u32 %v256_v52, 30  ;;  %v280_v19 = vsub.s32 4, %v256_v52 }
  0xc9   :  { %377 = vmatpush.msra.mxu2 %v354_v31  ;;  %v511_v31 = vld [vmem:[#allocation10 + $0x290] sm:$0xff] }
  0xca   :  { %v258_v51 = vsub.s32 %v254_v49, %v257_v53  ;;  %v281_v27 = vsel %vm158_vm13, %v280_v19, %v256_v52  ;;  %v147_v49 = vand.u32 1, %v135_v43  ;;  %v352_v53 = vld [vmem:[#allocation10 + $0xf0] sm:$0xff]  ;;  %v520_v19 = vld [vmem:[#allocation10 + $0x2d8] sm:$0xff]  ;;  %v496_v43 = vld [vmem:[#allocation10 + $0x220] sm:$0xff] }
  0xcb   :  { %v283_v35 = vsel %vm1107_vm14, 0, %v281_v27  ;;  %378 = vmatpush.msra.mxu2 %v353_v47  ;;  %v499_v27 = vld [vmem:[#allocation10 + $0x238] sm:$0xff]  ;;  %v493_v47 = vld [vmem:[#allocation10 + $0x208] sm:$0xff] }
  0xcc   :  { %vm259_vm11 = vcmp.lt.s32.totalorder %v258_v51, 0  ;;  %v260_v54 = vsub.s32 0, %v258_v51  ;;  %v300_v42 = vadd.s32 3, %v283_v35  ;;  %vm155_vm2 = vcmp.eq.s32.totalorder %v147_v49, 0  ;;  %v492_v49 = vld [vmem:[#allocation10 + $0x200] sm:$0xff] }
  0xcd   :  { %379 = vmatpush.msra.mxu2 %v352_v53  ;;  %v507_v53 = vld [vmem:[#allocation10 + $0x270] sm:$0xff] }
  0xce   :  { %v261_v56 = vsel %vm259_vm11, %v260_v54, %v258_v51  ;;  %v301_v48 = vand.u32 3, %v300_v42  ;;  %v513_v42 = vld [vmem:[#allocation10 + $0x2a0] sm:$0xff] }
  0xcf   :  { %v262_v57 = vclz %v261_v56 }
  0xd0   :  { %vm303_vm15 = vcmp.eq.s32.totalorder %v301_v48, 0  ;;  %vm306_vm1 = vcmp.eq.s32.totalorder %v301_v48, 2  ;;  %vm302_vm3 = vcmp.lt.s32.totalorder %v301_v48, 2  ;;  %v509_v48 = vld [vmem:[#allocation10 + $0x280] sm:$0xff] }
  0xd1   :  { %v777_v58 = vadd.s32 4294967294, %v262_v57 }
  0xd3   :  { %vm778_vm12 = vcmp.lt.s32.totalorder %v777_v58, 0 }
  0xd4   :  { %v265_v59 = vsel %vm778_vm12, 0, %v777_v58 }
  0xd5   :  { %v266_v60 = vsub.s32 32, %v265_v59  ;;  %v270_v61 = vsub.s32 4294967266, %v265_v59  ;;  %v267_v62 = vshll.u32 %v258_v51, %v265_v59 }
  0xd7   :  { %v268_v63 = vshrl.u32 %v250_v32, %v266_v60  ;;  %v271_v0 = vadd.s32 127, %v270_v61  ;;  %v351_v32 = vld [vmem:[#allocation10 + $0xe8] sm:$0xff]  ;;  %v386_v60 = vld [vmem:[#allocation10 + $0x40] sm:$0xff] }
  0xd8   :  { %380 = vmatpush.msra.mxu2 %v351_v32  ;;  %v350_v61 = vld [vmem:[#allocation10 + $0xe0] sm:$0xff]  ;;  %409 = vmatpush.msra.mxu3 %v386_v60  ;;  %v580_v32 = vld [vmem:[#allocation10 + $0x358] sm:$0xff] }
  0xd9   :  { %v269_v55 = vor.u32 %v268_v63, %v267_v62  ;;  %v272_v1 = vshll.u32 %v271_v0, 23  ;;  %v96_v62 = vld [vmem:[#allocation7] sm:$0xff]  ;;  %432 = vmatpush.msrb.mxu0 %v386_v60 }
  0xda   :  { %381 = vmatpush.msra.mxu2 %v350_v61  ;;  %779 = vmatmul.msk.f32.vlgmr.msra.gmra.mxu3 %vm390_vm5, %v96_v62  ;;  %v800_v63 = vld [vmem:[#allocation10 + $0x10] ss:$0 sm:$0xff]  ;;  %v594_v62 = vld [vmem:[#allocation10 + $0x3c8] sm:$0xff] }
  0xdb   :  { %v273_v2 = vor.u32 4788187, %v272_v1  ;;  %v276_v6 = vcvt.s32.f32 %v269_v55  ;;  %v459_v1 = vld [vmem:[#allocation10 + $0x1d8] sm:$0xff]  ;;  %780 = vmatmul.msk.f32.vlgmr.msrb.gmra.mxu0 %vm390_vm5, %v95_v18  ;;  %v595_v60 = vld [vmem:[#allocation10 + $0x3d0] sm:$0xff]  ;;  %v585_v18 = vld [vmem:[#allocation10 + $0x380] sm:$0xff] }
  0xdc   :  { %460 = vmatpush.msrb.mxu3 %v459_v1  ;;  %521 = vmatpush.msra.mxu0 %v520_v19  ;;  %v579_v61 = vld [vmem:[#allocation10 + $0x350] sm:$0xff]  ;;  %v592_v1 = vld [vmem:[#allocation10 + $0x3b8] sm:$0xff]  ;;  %v569_v19 = vld [vmem:[#allocation10 + $0x300] sm:$0xff] }
  0xdd   :  { %v274_v5 = vand.u32 2147483647, %v273_v2  ;;  %v458_v2 = vld [vmem:[#allocation10 + $0x1d0] sm:$0xff] }
  0xde   :  { %461 = vmatpush.msrb.mxu3 %v458_v2  ;;  %v576_v2 = vld [vmem:[#allocation10 + $0x338] sm:$0xff] }
  0xdf   :  { %v277_v8 = vmul.f32 %v276_v6, %v274_v5  ;;  %v454_v5 = vld [vmem:[#allocation10 + $0x1b0] sm:$0xff]  ;;  %v453_v6 = vld [vmem:[#allocation10 + $0x1a8] sm:$0xff] }
  0xe1   :  { %v278_v12 = vxor.u32 2147483648, %v277_v8 }
  0xe3   :  { %v279_v17 = vsel %vm158_vm13, %v278_v12, %v277_v8  ;;  %v451_v8 = vld [vmem:[#allocation10 + $0x198] sm:$0xff]  ;;  %v448_v12 = vld [vmem:[#allocation10 + $0x180] sm:$0xff] }
  0xe4   :  { %v282_v20 = vsel %vm1107_vm14, %v1053_v16, %v279_v17  ;;  %v444_v17 = vld [vmem:[#allocation10 + $0x160] sm:$0xff] }
  0xe5   :  { %v284_v21 = vmul.f32 %v282_v20, %v282_v20 }
  0xe7   :  { %v285_v23 = vmul.f32 -0.001358992, %v284_v21  ;;  %v292_v25 = vmul.f32 -0.00019511016, %v284_v21 }
  0xe9   :  { %v286_v28 = vadd.f32 0.041655596, %v285_v23  ;;  %v293_v29 = vadd.f32 0.008332121, %v292_v25  ;;  %v518_v23 = vld [vmem:[#allocation10 + $0x2c8] sm:$0xff]  ;;  %v500_v25 = vld [vmem:[#allocation10 + $0x240] sm:$0xff] }
  0xeb   :  { %v287_v36 = vmul.f32 %v286_v28, %v284_v21  ;;  %v294_v37 = vmul.f32 %v293_v29, %v284_v21  ;;  %v516_v28 = vld [vmem:[#allocation10 + $0x2b8] sm:$0xff]  ;;  %v498_v29 = vld [vmem:[#allocation10 + $0x230] sm:$0xff] }
  0xed   :  { %v288_v39 = vadd.f32 -0.4999988, %v287_v36  ;;  %v295_v40 = vadd.f32 -0.16666654, %v294_v37 }
  0xef   :  { %v289_v44 = vmul.f32 %v288_v39, %v284_v21  ;;  %v296_v45 = vmul.f32 %v295_v40, %v284_v21  ;;  %v519_v21 = vld [vmem:[#allocation10 + $0x2d0] sm:$0xff]  ;;  %v514_v40 = vld [vmem:[#allocation10 + $0x2a8] sm:$0xff] }
  0xf0   :  { %522 = vmatpush.msra.mxu0 %v519_v21  ;;  %v584_v21 = vld [vmem:[#allocation10 + $0x378] sm:$0xff] }
  0xf1   :  { %v290_v34 = vadd.f32 1.0, %v289_v44  ;;  %v297_v46 = vadd.f32 1.0, %v296_v45  ;;  %v512_v44 = vld [vmem:[#allocation10 + $0x298] sm:$0xff] }
  0xf2   :  { %523 = vmatpush.msra.mxu0 %v518_v23  ;;  %v495_v45 = vld [vmem:[#allocation10 + $0x218] sm:$0xff] }
  0xf3   :  { %v298_v50 = vmul.f32 %v297_v46, %v282_v20  ;;  %v307_v52 = vxor.u32 2147483648, %v290_v34  ;;  %v503_v20 = vld [vmem:[#allocation10 + $0x258] sm:$0xff]  ;;  %v510_v46 = vld [vmem:[#allocation10 + $0x288] sm:$0xff] }
  0xf4   :  { %541 = vmatpush.msrb.mxu1 %v503_v20  ;;  %524 = vmatpush.msra.mxu0 %v517_v26 }
  0xf5   :  { %v304_v51 = vxor.u32 2147483648, %v298_v50  ;;  %v308_v56 = vsel %vm306_vm1, %v307_v52, %v298_v50  ;;  %v508_v50 = vld [vmem:[#allocation10 + $0x278] sm:$0xff] }
  0xf6   :  { %542 = vmatpush.msrb.mxu1 %v502_v22  ;;  %525 = vmatpush.msra.mxu0 %v516_v28  ;;  %v491_v52 = vld [vmem:[#allocation10 + $0x1f8] sm:$0xff] }
  0xf7   :  { %v305_v54 = vsel %vm303_vm15, %v290_v34, %v304_v51  ;;  %v494_v34 = vld [vmem:[#allocation10 + $0x210] sm:$0xff]  ;;  %v568_v22 = vld [vmem:[#allocation10 + $0x2f8] sm:$0xff] }
  0xf8   :  { %v309_v57 = vsel %vm302_vm3, %v305_v54, %v308_v56  ;;  %543 = vmatpush.msrb.mxu1 %v501_v24  ;;  %526 = vmatpush.msra.mxu0 %v515_v30  ;;  %v490_v51 = vld [vmem:[#allocation10 + $0x1f0] sm:$0xff]  ;;  %v506_v54 = vld [vmem:[#allocation10 + $0x268] sm:$0xff] }
  0xf9   :  { %v310_v58 = vsel %vm299_vm4, nan, %v309_v57  ;;  %v489_v56 = vld [vmem:[#allocation10 + $0x1e8] sm:$0xff]  ;;  %v505_v57 = vld [vmem:[#allocation10 + $0x260] sm:$0xff]  ;;  %v583_v30 = vld [vmem:[#allocation10 + $0x370] sm:$0xff] }
  0xfa   :  { %v311_v59 = vsel %vm155_vm2, %v310_v58, %v1053_v16  ;;  %v457_v16 = vld [vmem:[#allocation10 + $0x1c8] sm:$0xff]  ;;  %544 = vmatpush.msrb.mxu1 %v500_v25  ;;  %527 = vmatpush.msra.mxu0 %v514_v40  ;;  %v488_v58 = vld [vmem:[#allocation10 + $0x1e0] sm:$0xff] }
  0xfb   :  { %346 = vmatmul.f32.vlgmr.msra.gmra.mxu1 %v311_v59  ;;  %462 = vmatpush.msrb.mxu3 %v457_v16  ;;  %v596_v59 = vld [vmem:[#allocation10 + $0x3d8] sm:$0xff]  ;;  %v591_v16 = vld [vmem:[#allocation10 + $0x3b0] sm:$0xff]  ;;  %v565_v40 = vld [vmem:[#allocation10 + $0x2e0] sm:$0xff] }
  0xfc   :  { %545 = vmatpush.msrb.mxu1 %v499_v27  ;;  %528 = vmatpush.msra.mxu0 %v513_v42  ;;  %v676_v42 = vld [vmem:[#allocation10 + $0x450] sm:$0xff] }
  0xfd   :  { %463 = vmatpush.msrb.mxu3 %v456_v3  ;;  %597 = vmatpush.msrb.mxu2 %v596_v59  ;;  %v575_v3 = vld [vmem:[#allocation10 + $0x330] sm:$0xff]  ;;  %v662_v59 = vld [vmem:[#allocation10 + $0x3e0] sm:$0xff] }
  0xfe   :  { %546 = vmatpush.msrb.mxu1 %v498_v29  ;;  %529 = vmatpush.msra.mxu0 %v512_v44  ;;  %v673_v44 = vld [vmem:[#allocation10 + $0x438] sm:$0xff] }
  0xff   :  { %464 = vmatpush.msrb.mxu3 %v455_v4  ;;  %598 = vmatpush.msrb.mxu2 %v595_v60  ;;  %v617_v4 = vld [vmem:[#allocation10 + $0x38] sm:$0xff]  ;;  %v715_v60 = vld [vmem:[#allocation10 + $0x4d0] sm:$0xff] }
 0x100   :  { %547 = vmatpush.msrb.mxu1 %v497_v41  ;;  %530 = vmatpush.msra.mxu0 %v511_v31  ;;  %v677_v41 = vld [vmem:[#allocation10 + $0x458] sm:$0xff]  ;;  %v671_v31 = vld [vmem:[#allocation10 + $0x428] sm:$0xff] }
 0x101   :  { %465 = vmatpush.msrb.mxu3 %v454_v5  ;;  %599 = vmatpush.msrb.mxu2 %v594_v62  ;;  %v590_v5 = vld [vmem:[#allocation10 + $0x3a8] sm:$0xff]  ;;  %v713_v62 = vld [vmem:[#allocation10 + $0x4c0] sm:$0xff] }
 0x102   :  { %548 = vmatpush.msrb.mxu1 %v496_v43  ;;  %531 = vmatpush.msra.mxu0 %v510_v46  ;;  %v674_v43 = vld [vmem:[#allocation10 + $0x440] sm:$0xff]  ;;  %v669_v46 = vld [vmem:[#allocation10 + $0x418] sm:$0xff] }
 0x103   :  { %466 = vmatpush.msrb.mxu3 %v453_v6  ;;  %v574_v6 = vld [vmem:[#allocation10 + $0x328] sm:$0xff] }
 0x104   :  { %549 = vmatpush.msrb.mxu1 %v495_v45  ;;  %532 = vmatpush.msra.mxu0 %v509_v48  ;;  %v672_v45 = vld [vmem:[#allocation10 + $0x430] sm:$0xff]  ;;  %v801_v48 = vld [vmem:[#allocation10 + $0x18] ss:$0 sm:$0xff] }
 0x105   :  { %467 = vmatpush.msrb.mxu3 %v452_v7  ;;  %v589_v7 = vld [vmem:[#allocation10 + $0x3a0] sm:$0xff] }
 0x106   :  { %550 = vmatpush.msrb.mxu1 %v494_v34  ;;  %533 = vmatpush.msra.mxu0 %v508_v50  ;;  %v670_v34 = vld [vmem:[#allocation10 + $0x420] sm:$0xff] }
 0x107   :  { %468 = vmatpush.msrb.mxu3 %v451_v8  ;;  %v573_v8 = vld [vmem:[#allocation10 + $0x320] sm:$0xff] }
 0x108   :  { %551 = vmatpush.msrb.mxu1 %v493_v47  ;;  %534 = vmatpush.msra.mxu0 %v507_v53  ;;  %v668_v47 = vld [vmem:[#allocation10 + $0x410] sm:$0xff] }
 0x109   :  { %469 = vmatpush.msrb.mxu3 %v450_v9 }
 0x10a   :  { %552 = vmatpush.msrb.mxu1 %v492_v49  ;;  %535 = vmatpush.msra.mxu0 %v506_v54  ;;  %v666_v54 = vld [vmem:[#allocation10 + $0x400] sm:$0xff] }
 0x10b   :  { %470 = vmatpush.msrb.mxu3 %v449_v11  ;;  %v572_v11 = vld [vmem:[#allocation10 + $0x318] sm:$0xff] }
 0x10c   :  { %553 = vmatpush.msrb.mxu1 %v491_v52  ;;  %536 = vmatpush.msra.mxu0 %v505_v57  ;;  %v664_v57 = vld [vmem:[#allocation10 + $0x3f0] sm:$0xff] }
 0x10d   :  { %471 = vmatpush.msrb.mxu3 %v448_v12  ;;  %v587_v12 = vld [vmem:[#allocation10 + $0x390] sm:$0xff] }
 0x10e   :  { %554 = vmatpush.msrb.mxu1 %v490_v51  ;;  %642 = vmatpush.msrb.mxu0 %v580_v32  ;;  %v667_v51 = vld [vmem:[#allocation10 + $0x408] sm:$0xff]  ;;  %v716_v32 = vld [vmem:[#allocation10 + $0x4d8] sm:$0xff] }
 0x10f   :  { %472 = vmatpush.msrb.mxu3 %v447_v13  ;;  %v571_v13 = vld [vmem:[#allocation10 + $0x310] sm:$0xff] }
 0x110   :  { %555 = vmatpush.msrb.mxu1 %v489_v56  ;;  %643 = vmatpush.msrb.mxu0 %v579_v61  ;;  %v665_v56 = vld [vmem:[#allocation10 + $0x3f8] sm:$0xff]  ;;  %v714_v61 = vld [vmem:[#allocation10 + $0x4c8] sm:$0xff] }
 0x111   :  { %473 = vmatpush.msrb.mxu3 %v446_v14  ;;  %v586_v14 = vld [vmem:[#allocation10 + $0x388] sm:$0xff] }
 0x112   :  { %556 = vmatpush.msrb.mxu1 %v488_v58  ;;  %v663_v58 = vld [vmem:[#allocation10 + $0x3e8] sm:$0xff] }
 0x113   :  { %474 = vmatpush.msrb.mxu3 %v445_v15  ;;  %v570_v15 = vld [vmem:[#allocation10 + $0x308] sm:$0xff] }
 0x114   :  { %719 = vmatpush.msra.mxu1 %v716_v32 }
 0x115   :  { %475 = vmatpush.msrb.mxu3 %v444_v17 }
 0x116   :  { %720 = vmatpush.msra.mxu1 %v715_v60 }
 0x117   :  { %636 = vmatpush.msra.mxu3 %v617_v4  ;;  %v705_v4 = vld [vmem:[#allocation10 + $0x480] sm:$0xff] }
 0x118   :  { %721 = vmatpush.msra.mxu1 %v714_v61 }
 0x11a   :  { %722 = vmatpush.msra.mxu1 %v713_v62 }
 0x158   :  { %v434_v25 = vpop.f32.mrf.mxu0 }
 0x15d   :  { %v1124_v33 = vpop.f32.mrf.mxu3 }
 0x15e   :  { %vm439_vm6 = vcmp.eq.f32.partialorder %v1124_v33, 0.0 }
 0x178   :  { %v347_v0 = vpop.f32.mrf.mxu1 }
 0x179   :  { %v348_v55 = vadd.f32 %v800_v63, %v347_v0  ;;  %v578_v63 = vld [vmem:[#allocation10 + $0x348] sm:$0xff]  ;;  %v593_v0 = vld [vmem:[#allocation10 + $0x3c0] sm:$0xff] }
 0x17a   :  { %644 = vmatpush.msrb.mxu0 %v578_v63  ;;  %600 = vmatpush.msrb.mxu2 %v593_v0  ;;  %v712_v63 = vld [vmem:[#allocation10 + $0x4b8] sm:$0xff]  ;;  %v711_v0 = vld [vmem:[#allocation10 + $0x4b0] sm:$0xff] }
 0x17b   :  { %382 = vmatmul.f32.vlgmr.msra.gmra.mxu2 %v348_v55  ;;  %v577_v55 = vld [vmem:[#allocation10 + $0x340] sm:$0xff]  ;;  %723 = vmatpush.msra.mxu1 %v712_v63 }
 0x17c   :  { %645 = vmatpush.msrb.mxu0 %v577_v55  ;;  %601 = vmatpush.msrb.mxu2 %v592_v1  ;;  %v710_v55 = vld [vmem:[#allocation10 + $0x4a8] sm:$0xff]  ;;  %v709_v1 = vld [vmem:[#allocation10 + $0x4a0] sm:$0xff] }
 0x17d   :  { %724 = vmatpush.msra.mxu1 %v711_v0 }
 0x17e   :  { %646 = vmatpush.msrb.mxu0 %v576_v2  ;;  %602 = vmatpush.msrb.mxu2 %v591_v16  ;;  %v708_v2 = vld [vmem:[#allocation10 + $0x498] sm:$0xff]  ;;  %v707_v16 = vld [vmem:[#allocation10 + $0x490] sm:$0xff] }
 0x17f   :  { %725 = vmatpush.msra.mxu1 %v710_v55 }
 0x180   :  { %647 = vmatpush.msrb.mxu0 %v575_v3  ;;  %603 = vmatpush.msrb.mxu2 %v590_v5  ;;  %v706_v3 = vld [vmem:[#allocation10 + $0x488] sm:$0xff]  ;;  %v704_v5 = vld [vmem:[#allocation10 + $0x478] sm:$0xff] }
 0x181   :  { %726 = vmatpush.msra.mxu1 %v709_v1 }
 0x182   :  { %648 = vmatpush.msrb.mxu0 %v574_v6  ;;  %604 = vmatpush.msrb.mxu2 %v589_v7 }
 0x183   :  { %727 = vmatpush.msra.mxu1 %v708_v2 }
 0x184   :  { %649 = vmatpush.msrb.mxu0 %v573_v8 }
 0x185   :  { %728 = vmatpush.msra.mxu1 %v707_v16 }
 0x186   :  { %650 = vmatpush.msrb.mxu0 %v572_v11  ;;  %v703_v11 = vld [vmem:[#allocation10 + $0x470] sm:$0xff] }
 0x187   :  { %729 = vmatpush.msra.mxu1 %v706_v3 }
 0x188   :  { %651 = vmatpush.msrb.mxu0 %v571_v13  ;;  %v701_v13 = vld [vmem:[#allocation10 + $0x460] sm:$0xff] }
 0x189   :  { %730 = vmatpush.msra.mxu1 %v705_v4 }
 0x18a   :  { %652 = vmatpush.msrb.mxu0 %v570_v15 }
 0x18b   :  { %731 = vmatpush.msra.mxu1 %v704_v5 }
 0x18c   :  { %653 = vmatpush.msrb.mxu0 %v569_v19  ;;  %v803_v19 = vld [vmem:[#allocation10 + $0x28] ss:$0 sm:$0xff] }
 0x18d   :  { %732 = vmatpush.msra.mxu1 %v703_v11 }
 0x18e   :  { %654 = vmatpush.msrb.mxu0 %v568_v22 }
 0x1fe   :  { %v383_v10 = vpop.f32.mrf.mxu2 }
 0x1ff   :  { %437 = vmax.xlane.f32.xlu0 %v383_v10  ;;  %v440_v36 = vsel %vm439_vm6, -1e+09, %v383_v10  ;;  %v588_v10 = vld [vmem:[#allocation10 + $0x398] sm:$0xff] }
 0x200   :  { %605 = vmatpush.msrb.mxu2 %v588_v10 }
 0x202   :  { %606 = vmatpush.msrb.mxu2 %v587_v12  ;;  %v702_v12 = vld [vmem:[#allocation10 + $0x468] sm:$0xff] }
 0x203   :  { %733 = vmatpush.msra.mxu1 %v702_v12 }
 0x204   :  { %607 = vmatpush.msrb.mxu2 %v586_v14  ;;  %v802_v14 = vld [vmem:[#allocation10 + $0x20] ss:$0 sm:$0xff] }
 0x205   :  { %734 = vmatpush.msra.mxu1 %v701_v13 }
 0x206   :  { %608 = vmatpush.msrb.mxu2 %v585_v18 }
 0x208   :  { %609 = vmatpush.msrb.mxu2 %v584_v21 }
 0x20a   :  { %610 = vmatpush.msrb.mxu2 %v583_v30 }
 0x272   :  { %v438_v35 = vpop.xlane.xlu0 %437 }
 0x273   :  { %v441_v37 = vsub.f32 %v440_v36, %v438_v35  ;;  %v567_v35 = vld [vmem:[#allocation10 + $0x2f0] sm:$0xff]  ;;  %v582_v36 = vld [vmem:[#allocation10 + $0x368] sm:$0xff] }
 0x274   :  { %655 = vmatpush.msrb.mxu0 %v567_v35  ;;  %611 = vmatpush.msrb.mxu2 %v582_v36 }
 0x275   :  { %v442_v38 = vmul.f32 1.442695, %v441_v37  ;;  %v566_v37 = vld [vmem:[#allocation10 + $0x2e8] sm:$0xff] }
 0x276   :  { %656 = vmatpush.msrb.mxu0 %v566_v37 }
 0x277   :  { %804 = vpow2.f32 %v442_v38  ;;  %v581_v38 = vld [vmem:[#allocation10 + $0x360] sm:$0xff] }
 0x278   :  { %612 = vmatpush.msrb.mxu2 %v581_v38  ;;  %657 = vmatpush.msrb.mxu0 %v565_v40 }
 0x27d   :  { %v1127_v39 = vpop.eup %804 }
 0x27e   :  { %476 = vmatmul.f32.vlgmr.msrb.gmra.mxu3 %v1127_v39 }
 0x27f   :  { %680 = vmatpush.msrb.mxu3 %v677_v41 }
 0x281   :  { %681 = vmatpush.msrb.mxu3 %v676_v42 }
 0x301   :  { %v477_v9 = vpop.f32.mrf.mxu3 }
 0x302   :  { %806 = vrcp.f32 %v477_v9  ;;  %vm484_vm7 = vcmp.gt.f32.partialorder %v477_v9, 0.0 }
 0x308   :  { %v807_v17 = vpop.eup %806 }
 0x309   :  { %v481_v20 = vmul.f32 %v807_v17, %v477_v9 }
 0x30b   :  { %v482_v24 = vsub.f32 2.0, %v481_v20 }
 0x30d   :  { %v483_v23 = vmul.f32 %v807_v17, %v482_v24 }
 0x30f   :  { %v485_v26 = vmul.f32 %v1127_v39, %v483_v23  ;;  %v97_v39 = vld [vmem:[#allocation8] sm:$0xff] }
 0x310   :  { %781 = vmatmul.msk.f32.vlgmr.msra.gmra.mxu3 %vm99_vm0, %v97_v39 }
 0x311   :  { %v486_v27 = vsel %vm484_vm7, %v485_v26, 0.125 }
 0x312   :  { %v487_v28 = vmul.f32 %v486_v27, %v434_v25  ;;  %v504_v29 = vmul.f32 %v486_v27, %v1124_v33  ;;  %v675_v33 = vld [vmem:[#allocation10 + $0x448] sm:$0xff] }
 0x313   :  { %682 = vmatpush.msrb.mxu3 %v675_v33 }
 0x314   :  { %537 = vmatmul.f32.vlgmr.msra.gmra.mxu0 %v504_v29  ;;  %557 = vmatmul.f32.vlgmr.msrb.gmra.mxu1 %v487_v28 }
 0x315   :  { %683 = vmatpush.msrb.mxu3 %v674_v43 }
 0x317   :  { %684 = vmatpush.msrb.mxu3 %v673_v44 }
 0x319   :  { %685 = vmatpush.msrb.mxu3 %v672_v45 }
 0x31b   :  { %686 = vmatpush.msrb.mxu3 %v671_v31 }
 0x31d   :  { %687 = vmatpush.msrb.mxu3 %v670_v34 }
 0x31f   :  { %688 = vmatpush.msrb.mxu3 %v669_v46 }
 0x321   :  { %689 = vmatpush.msrb.mxu3 %v668_v47 }
 0x323   :  { %690 = vmatpush.msrb.mxu3 %v667_v51 }
 0x325   :  { %691 = vmatpush.msrb.mxu3 %v666_v54 }
 0x327   :  { %692 = vmatpush.msrb.mxu3 %v665_v56 }
 0x329   :  { %693 = vmatpush.msrb.mxu3 %v664_v57 }
 0x32b   :  { %694 = vmatpush.msrb.mxu3 %v663_v58 }
 0x32d   :  { %695 = vmatpush.msrb.mxu3 %v662_v59 }
 0x391   :  { %v538_v49 = vpop.f32.mrf.mxu0  ;;  %v558_v50 = vpop.f32.mrf.mxu1 }
 0x392   :  { %v559_v52 = vadd.f32 %v558_v50, %v538_v49 }
 0x393   :  { %v638_v6 = vpop.f32.mrf.mxu3 }
 0x394   :  { %v563_v53 = vadd.f32 %v801_v48, %v559_v52 }
 0x396   :  { %564 = vst [vmem:[#allocation12] sm:$0xff] %v563_v53  ;;  %613 = vmatmul.f32.vlgmr.msrb.gmra.mxu2 %v563_v53  ;;  %658 = vmatmul.f32.vlgmr.msrb.gmra.mxu0 %v563_v53 }
 0x397   :  { %761 = dma.vmem_to_hbm [thread:$0]  %s757_s4, 128, %s759_s23, [#allocation13]  }
 0x413   :  { %v659_v9 = vpop.f32.mrf.mxu0 }
 0x419   :  { %v614_v7 = vpop.f32.mrf.mxu2 }
 0x41a   :  { %v641_v8 = vmul.f32 %v638_v6, %v614_v7 }
 0x41c   :  { %v660_v10 = vadd.f32 %v659_v9, %v641_v8 }
 0x41e   :  { %696 = vmatmul.f32.vlgmr.msrb.gmra.mxu3 %v660_v10 }
 0x4a1   :  { %v697_v15 = vpop.f32.mrf.mxu3 }
 0x4a2   :  { %v698_v17 = vadd.f32 %v802_v14, %v697_v15 }
 0x4a4   :  { %v700_v18 = vmax.f32 %v698_v17, 0.0 }
 0x4a6   :  { %735 = vmatmul.f32.vlgmr.msra.gmra.mxu1 %v700_v18 }
 0x523   :  { %v736_v20 = vpop.f32.mrf.mxu1 }
 0x524   :  { %v737_v21 = vadd.f32 %v803_v19, %v736_v20 }
 0x526   :  { %739 = vst [vmem:[#allocation11] sm:$0xff] %v737_v21 }
 0x527   :  { %750 = dma.vmem_to_hbm [thread:$0]  %s746_s25, 128, %s748_s28, [#allocation4]  }
 0x528   :  { %982 = dma.done.wait [#allocation4], 128  }
 0x529   :  { %983 = vsyncadd [#allocation4], 4294967168 }
 0x52a   :  { %984 = dma.done.wait [#allocation13], 128  }
 0x52b   :  { %985 = vsyncadd [#allocation13], 4294967168 }
 0x52c   :  { %770 = vsyncpa [#allocation3], 1 }
 0x52d   :  { %771 = vsyncpa [#allocation6], 1 }
 0x52e   :  { %772 = vsyncpa [#allocation9], 1 }
 0x52f   :  { %773 = vsyncpa [#allocation4], 1 }
 0x530   :  { %774 = vsyncpa [#allocation13], 1 }

</bundles_post_ra>
